<compile_context>
chip_gen: v6e
topology: v6e:2x2x1
jax: 0.10.0
libtpu: 0.0.40
codegen_flags: <defaults>
</compile_context>

<pallas_src>
import math
import functools

import jax
import jax.numpy as jnp
from jax import lax
from jax.experimental import pallas as pl
from jax.experimental.pallas import tpu as pltpu

_MASK_VALUE = -1e30  # finite "minus infinity": NaN-safe under max/exp


def _pick_block(total: int, target: int) -> int:
    """Largest block <= target that divides `total` and is a multiple of 8
    (or the full extent)."""
    target = min(target, total)
    for cand in range(target, 0, -1):
        if total % cand == 0 and (cand % 8 == 0 or cand == total):
            return cand
    return total


# ----------------------------------------------------------------------------
# Fused linear kernel: y = x @ W + b, lane-dense output width d_out.
#   x2d: (R, d_in), w: (d_in, d_out), b: (1, d_out) -> (R, d_out)
# ----------------------------------------------------------------------------
def _linear_kernel(x_ref, w_ref, b_ref, o_ref):
    y = jnp.dot(x_ref[...], w_ref[...], preferred_element_type=jnp.float32)
    o_ref[...] = (y + b_ref[...]).astype(o_ref.dtype)


def _linear(x2d, w, b, *, block_rows=512, out_dtype=None):
    R, d_in = x2d.shape
    d_out = w.shape[1]
    out_dtype = x2d.dtype if out_dtype is None else out_dtype
    br = _pick_block(R, block_rows)

    return pl.pallas_call(
        _linear_kernel,
        out_shape=jax.ShapeDtypeStruct((R, d_out), out_dtype),
        grid_spec=pltpu.PrefetchScalarGridSpec(
            num_scalar_prefetch=0,
            grid=(R // br,),
            in_specs=[
                pl.BlockSpec((br, d_in), lambda r: (r, 0)),
                # Constant index maps -> weight/bias stay resident (no re-DMA).
                # TODO(synk): pipeline_mode=pl.Buffered(1) for the resident weight
                # on VMEM-tight configs (v7x, large d_model) to skip double-buffering.
                pl.BlockSpec((d_in, d_out), lambda r: (0, 0)),
                pl.BlockSpec((1, d_out), lambda r: (0, 0)),
            ],
            out_specs=pl.BlockSpec((br, d_out), lambda r: (r, 0)),
        ),
        compiler_params=pltpu.CompilerParams(dimension_semantics=("parallel",)),
    )(x2d, w, b)


# ----------------------------------------------------------------------------
# Tiled multi-head attention with online softmax, fused head layout.
#   qf: (B, Sq, H*d_qk)  (Q already scaled by 1/sqrt(d_model))
#   kf: (B, Sk, H*d_qk)
#   vf: (B, Sk, H*d_v)
#   out: (B, Sq, H*d_v)   lane-dense, ready for the output Linear
# ----------------------------------------------------------------------------
def _mha_fused_kernel(q_ref, k_ref, v_ref, o_ref, m_sc, l_sc, acc_sc,
                      *, n_heads, d_qk, d_v, masked, approx_recip):
    qi = pl.program_id(1)
    ki = pl.program_id(2)
    nk = pl.num_programs(2)
    TQ = q_ref.shape[0]
    TK = k_ref.shape[0]

    @pl.when(ki == 0)
    def _init():
        m_sc[...] = jnp.full(m_sc.shape, _MASK_VALUE, m_sc.dtype)
        l_sc[...] = jnp.zeros(l_sc.shape, l_sc.dtype)
        acc_sc[...] = jnp.zeros(acc_sc.shape, acc_sc.dtype)

    def _attend(apply_mask):
        if apply_mask:
            # Built once per straddling block, shared across heads.
            row = qi * TQ + lax.broadcasted_iota(jnp.int32, (TQ, TK), 0)
            col = ki * TK + lax.broadcasted_iota(jnp.int32, (TQ, TK), 1)
            allow = col <= row
        for h in range(n_heads):
            q_h = q_ref[:, pl.ds(h * d_qk, d_qk)]        # (TQ, d_qk)
            k_h = k_ref[:, pl.ds(h * d_qk, d_qk)]        # (TK, d_qk)
            v_h = v_ref[:, pl.ds(h * d_v, d_v)]          # (TK, d_v)

            # Scores; softmax scale already folded into the Q projection.
            s = lax.dot_general(q_h, k_h, (((1,), (1,)), ((), ())),
                                preferred_element_type=jnp.float32)   # (TQ, TK)
            if apply_mask:
                s = jnp.where(allow, s, _MASK_VALUE)

            # Online softmax update; stats kept lane-dense (TQ, 128) in f32.
            m_prev = m_sc[h]
            l_prev = l_sc[h]
            m_curr = jnp.max(s, axis=-1, keepdims=True)          # (TQ, 1)
            m_next = jnp.maximum(m_prev, m_curr)                 # (TQ, 128)
            alpha = jnp.exp(m_prev - m_next)                     # (TQ, 128)
            # TODO(synk): on v6e/v7x the exp could run in bf16 on the EUP (p is
            # cast for the MXU anyway); kept f32 for accuracy parity with torch.
            p = jnp.exp(s - m_next[:, 0:1])                      # (TQ, TK)
            l_sc[h] = alpha * l_prev + jnp.sum(p, axis=-1, keepdims=True)
            pv = lax.dot_general(p.astype(v_h.dtype), v_h,
                                 (((1,), (0,)), ((), ())),
                                 preferred_element_type=jnp.float32)  # (TQ, d_v)
            acc_sc[h] = alpha[:, 0:1] * acc_sc[h] + pv
            m_sc[h] = m_next

    if masked:
        # Three regimes per (qi, ki) block:
        #   fully visible  -> attend without mask ops,
        #   straddling     -> attend with mask ops,
        #   fully masked   -> skip (its K/V DMA is also skipped via index_map).
        fully_visible = (ki * TK + (TK - 1)) <= (qi * TQ)
        attended = (ki * TK) <= (qi * TQ + (TQ - 1))

        @pl.when(fully_visible)
        def _full():
            _attend(False)

        @pl.when(jnp.logical_and(attended, jnp.logical_not(fully_visible)))
        def _diag():
            _attend(True)
    else:
        _attend(False)

    @pl.when(ki == nk - 1)
    def _finalize():
        for h in range(n_heads):
            l_h = l_sc[h]
            inv = pl.reciprocal(l_h[:, 0:1], approx=approx_recip)
            # Lane-dense output block: head h occupies lanes [h*d_v, (h+1)*d_v).
            o_ref[:, pl.ds(h * d_v, d_v)] = (acc_sc[h] * inv).astype(o_ref.dtype)


def _attention(qf, kf, vf, *, n_heads, d_qk, d_v, masked, block_q, block_k,
               approx_recip):
    B, Sq, _ = qf.shape
    _, Sk, _ = kf.shape
    blk_q = _pick_block(Sq, block_q)
    blk_k = _pick_block(Sk, block_k)
    TQ, TK = blk_q, blk_k

    q_map = lambda b, qi, ki: (b, qi, 0)
    if masked:
        def kv_map(b, qi, ki):
            # Clamp to the last causally-visible key block: fully-masked steps
            # map to an already-resident block index, so no K/V DMA is issued.
            last_visible = (qi * TQ + (TQ - 1)) // TK
            return (b, jnp.minimum(ki, last_visible), 0)
    else:
        kv_map = lambda b, qi, ki: (b, ki, 0)

    kernel = functools.partial(
        _mha_fused_kernel, n_heads=n_heads, d_qk=d_qk, d_v=d_v,
        masked=masked, approx_recip=approx_recip)

    return pl.pallas_call(
        kernel,
        out_shape=jax.ShapeDtypeStruct((B, Sq, n_heads * d_v), qf.dtype),
        grid_spec=pltpu.PrefetchScalarGridSpec(
            num_scalar_prefetch=0,
            grid=(B, Sq // blk_q, Sk // blk_k),
            in_specs=[
                pl.BlockSpec((None, blk_q, n_heads * d_qk), q_map),
                pl.BlockSpec((None, blk_k, n_heads * d_qk), kv_map),
                pl.BlockSpec((None, blk_k, n_heads * d_v), kv_map),
            ],
            out_specs=pl.BlockSpec((None, blk_q, n_heads * d_v), q_map),
            scratch_shapes=[
                pltpu.VMEM((n_heads, blk_q, 128), jnp.float32),   # running max
                pltpu.VMEM((n_heads, blk_q, 128), jnp.float32),   # running denom
                pltpu.VMEM((n_heads, blk_q, d_v), jnp.float32),   # PV accumulator
            ],
        ),
        compiler_params=pltpu.CompilerParams(
            dimension_semantics=("parallel", "parallel", "arbitrary")),
    )(qf, kf, vf)


# ----------------------------------------------------------------------------
# Full MultiHeadedAttention forward.
# ----------------------------------------------------------------------------
def multi_headed_attention(input_q, input_k, input_v, params, masked=False,
                           block_q=256, block_k=256, block_rows=512,
                           compute_dtype=jnp.bfloat16):
    B, Sq, d_model = input_q.shape
    _, Sk, _ = input_k.shape
    wq, bq = params['wq'], params['bq']          # (H, d_model, d_qk), (H, d_qk)
    wk, bk = params['wk'], params['bk']
    wv, bv = params['wv'], params['bv']          # (H, d_model, d_v), (H, d_v)
    wo_t, bo = params['wo_t'], params['bo']      # (H*d_v, d_model), (d_model,)

    H, _, d_qk = wq.shape
    d_v = wv.shape[-1]
    if masked and Sq != Sk:
        raise TypeError("Masking requires square attention (Sq == Sk)")

    cdt = compute_dtype
    scale = 1.0 / math.sqrt(d_model)             # per the source module

    # Fused, lane-dense projection weights; softmax scale folded into Q proj.
    wq_f = (wq * scale).transpose(1, 0, 2).reshape(d_model, H * d_qk).astype(cdt)
    wk_f = wk.transpose(1, 0, 2).reshape(d_model, H * d_qk).astype(cdt)
    wv_f = wv.transpose(1, 0, 2).reshape(d_model, H * d_v).astype(cdt)
    bq_f = (bq * scale).reshape(1, H * d_qk).astype(jnp.float32)
    bk_f = bk.reshape(1, H * d_qk).astype(jnp.float32)
    bv_f = bv.reshape(1, H * d_v).astype(jnp.float32)
    wo_c = wo_t.astype(cdt)
    bo_f = bo.reshape(1, d_model).astype(jnp.float32)

    # TODO(synk): for self-attention (input_q is input_k is input_v) the three
    # projections could be a single pallas_call on concatenated weights, reading
    # the activation tensor from HBM once instead of three times.

    # Flatten (B, S) -> rows: bigger tiles, better megacore balance; reshapes
    # on leading dims are free (no HBM transpose).
    q2 = input_q.reshape(B * Sq, d_model).astype(cdt)
    k2 = input_k.reshape(B * Sk, d_model).astype(cdt)
    v2 = input_v.reshape(B * Sk, d_model).astype(cdt)

    qf = _linear(q2, wq_f, bq_f, block_rows=block_rows, out_dtype=cdt)
    kf = _linear(k2, wk_f, bk_f, block_rows=block_rows, out_dtype=cdt)
    vf = _linear(v2, wv_f, bv_f, block_rows=block_rows, out_dtype=cdt)

    qf = qf.reshape(B, Sq, H * d_qk)
    kf = kf.reshape(B, Sk, H * d_qk)
    vf = vf.reshape(B, Sk, H * d_v)

    # Flash-style attention, fused head layout in and lane-dense (B,Sq,H*d_v) out.
    oc = _attention(qf, kf, vf, n_heads=H, d_qk=d_qk, d_v=d_v, masked=masked,
                    block_q=block_q, block_k=block_k,
                    approx_recip=(cdt != jnp.float32))

    # Output Linear directly on the lane-dense concat-heads tensor.
    out2 = _linear(oc.reshape(B * Sq, H * d_v), wo_c, bo_f,
                   block_rows=block_rows, out_dtype=input_q.dtype)
    return out2.reshape(B, Sq, d_model)


# ----------------------------------------------------------------------------
# Pure-JAX reference mirroring the PyTorch forward (per-head loop + concat + linear)
# ----------------------------------------------------------------------------
def reference_mha(input_q, input_k, input_v, params, masked=False):
    wq, bq = params['wq'], params['bq']
    wk, bk = params['wk'], params['bk']
    wv, bv = params['wv'], params['bv']
    wo_t, bo = params['wo_t'], params['bo']
    H = wq.shape[0]
    d_model = input_q.shape[-1]
    outs = []
    for h in range(H):
        Q = input_q @ wq[h] + bq[h]
        K = input_k @ wk[h] + bk[h]
        V = input_v @ wv[h] + bv[h]
        S = jnp.einsum('bqe,bke->bqk', Q, K)
        if masked:
            Sq, Sk = S.shape[1], S.shape[2]
            mask = jnp.triu(jnp.full((Sq, Sk), -jnp.inf), k=1)
            S = S + mask[None]
        P = jax.nn.softmax(S / math.sqrt(d_model), axis=-1)
        outs.append(jnp.einsum('bqk,bkv->bqv', P, V))
    concat = jnp.concatenate(outs, axis=-1)
    return concat @ wo_t + bo


def init_params(key, d_model, d_qk, d_v, n_heads):
    ks = jax.random.split(key, 8)
    s = 0.1
    return {
        'wq': s * jax.random.normal(ks[0], (n_heads, d_model, d_qk), jnp.float32),
        'bq': s * jax.random.normal(ks[1], (n_heads, d_qk), jnp.float32),
        'wk': s * jax.random.normal(ks[2], (n_heads, d_model, d_qk), jnp.float32),
        'bk': s * jax.random.normal(ks[3], (n_heads, d_qk), jnp.float32),
        'wv': s * jax.random.normal(ks[4], (n_heads, d_model, d_v), jnp.float32),
        'bv': s * jax.random.normal(ks[5], (n_heads, d_v), jnp.float32),
        # torch nn.Linear(d_v*H, d_model) weight is (d_model, d_v*H); we store W^T.
        'wo_t': s * jax.random.normal(ks[6], (n_heads * d_v, d_model), jnp.float32),
        'bo': s * jax.random.normal(ks[7], (d_model,), jnp.float32),
    }


if __name__ == "__main__":
    key = jax.random.PRNGKey(0)

    # ---- small shapes (module-consistent toy sizes) ----
    B, S, d_model, d_qk, d_v, H = 2, 8, 32, 16, 16, 4
    kq, kk, kv, kp, k2 = jax.random.split(key, 5)
    q = jax.random.normal(kq, (B, S, d_model), jnp.float32)
    k = jax.random.normal(kk, (B, S, d_model), jnp.float32)
    v = jax.random.normal(kv, (B, S, d_model), jnp.float32)
    params = init_params(kp, d_model, d_qk, d_v, H)

    # f32-operand path, unmasked (tight tolerance vs reference).
    out = multi_headed_attention(q, k, v, params, masked=False,
                                 compute_dtype=jnp.float32)
    out = jax.block_until_ready(out)
    ref = reference_mha(q, k, v, params, masked=False)
    assert out.shape == (B, S, d_model)
    assert jnp.allclose(out, ref, atol=5e-3, rtol=5e-3), "f32 unmasked mismatch"

    # bf16 MXU-operand path, causal mask.
    out_m = multi_headed_attention(q, k, v, params, masked=True)
    out_m = jax.block_until_ready(out_m)
    ref_m = reference_mha(q, k, v, params, masked=True)
    assert jnp.allclose(out_m, ref_m, atol=3e-2, rtol=3e-2), "bf16 masked mismatch"

    # ---- medium shapes: exercises Sq/Sk tiling, online softmax across key
    #      blocks, the diagonal-only masking path, and the causal K/V DMA skip
    #      (grid = (2, 2, 2)). ----
    B2, S2, dm2, dqk2, dv2, H2 = 2, 256, 64, 32, 32, 4
    kq2, kk2, kv2, kp2 = jax.random.split(k2, 4)
    q2 = jax.random.normal(kq2, (B2, S2, dm2), jnp.float32)
    k2_ = jax.random.normal(kk2, (B2, S2, dm2), jnp.float32)
    v2 = jax.random.normal(kv2, (B2, S2, dm2), jnp.float32)
    p2 = init_params(kp2, dm2, dqk2, dv2, H2)

    out2 = multi_headed_attention(q2, k2_, v2, p2, masked=True,
                                  block_q=128, block_k=128)
    out2 = jax.block_until_ready(out2)
    ref2 = reference_mha(q2, k2_, v2, p2, masked=True)
    assert out2.shape == (B2, S2, dm2)
    assert jnp.allclose(out2, ref2, atol=3e-2, rtol=3e-2), "tiled masked mismatch"

    print("KERNEL_OK")
</pallas_src>

<mosaic_0001>
module attributes {stable_mosaic.version = 11 : i64} {
  func.func @_linear_kernel(%arg0: i32, %arg1: memref<16x32xf32, #tpu.memory_space<vmem>>, %arg2: memref<32x64xf32, #tpu.memory_space<vmem>>, %arg3: memref<1x64xf32, #tpu.memory_space<vmem>>, %arg4: memref<16x64xf32, #tpu.memory_space<vmem>>) attributes {dimension_semantics = [#tpu.dimension_semantics<parallel>], iteration_bounds = array<i64: 1>, scalar_prefetch = 0 : i64, scratch_operands = 0 : i64, tpu.core_type = #tpu.core_type<tc>, window_params = [{transform_indices = @transform_0, window_bounds = array<i64: 16, 32>}, {pipeline_mode = #tpu.pipeline_mode<synchronous>, transform_indices = @transform_1, window_bounds = array<i64: 32, 64>}, {pipeline_mode = #tpu.pipeline_mode<synchronous>, transform_indices = @transform_2, window_bounds = array<i64: 1, 64>}, {transform_indices = @transform_3, window_bounds = array<i64: 16, 64>}]} {
    %c0 = arith.constant 0 : index
    %c0_0 = arith.constant 0 : index
    %0 = vector.load %arg1[%c0, %c0_0] : memref<16x32xf32, #tpu.memory_space<vmem>>, vector<16x32xf32>
    %c0_1 = arith.constant 0 : index
    %c0_2 = arith.constant 0 : index
    %1 = vector.load %arg2[%c0_1, %c0_2] : memref<32x64xf32, #tpu.memory_space<vmem>>, vector<32x64xf32>
    %cst = arith.constant dense<0.000000e+00> : vector<16x64xf32>
    %2 = tpu.matmul %0, %1, %cst {dimension_numbers = #tpu.dot_dimension_numbers<[1], [0], [0], [1], [0, 0, 1, 1], [], []>} : vector<16x32xf32>, vector<32x64xf32>, vector<16x64xf32> -> vector<16x64xf32>
    %c0_3 = arith.constant 0 : index
    %c0_4 = arith.constant 0 : index
    %3 = vector.load %arg3[%c0_3, %c0_4] : memref<1x64xf32, #tpu.memory_space<vmem>>, vector<1x64xf32>
    %4 = vector.broadcast %3 : vector<1x64xf32> to vector<16x64xf32>
    %5 = arith.addf %2, %4 : vector<16x64xf32>
    %c0_5 = arith.constant 0 : index
    %c0_6 = arith.constant 0 : index
    %6 = vector.load %arg4[%c0_5, %c0_6] : memref<16x64xf32, #tpu.memory_space<vmem>>, vector<16x64xf32>
    tpu.vector_store %arg4[%c0_5, %c0_6], %5 {strides = array<i32>} : memref<16x64xf32, #tpu.memory_space<vmem>>, vector<16x64xf32>,
    return
  }
  func.func @transform_0(%arg0: i32) -> (i32, i32) {
    %c0_i32 = arith.constant 0 : i32
    %c0_i32_0 = arith.constant 0 : i32
    return %arg0, %c0_i32 : i32, i32
  }
  func.func @transform_1(%arg0: i32) -> (i32, i32) {
    %c0_i32 = arith.constant 0 : i32
    %c0_i32_0 = arith.constant 0 : i32
    %c0_i32_1 = arith.constant 0 : i32
    return %c0_i32, %c0_i32_0 : i32, i32
  }
  func.func @transform_2(%arg0: i32) -> (i32, i32) {
    %c0_i32 = arith.constant 0 : i32
    %c0_i32_0 = arith.constant 0 : i32
    %c0_i32_1 = arith.constant 0 : i32
    return %c0_i32, %c0_i32_0 : i32, i32
  }
  func.func @transform_3(%arg0: i32) -> (i32, i32) {
    %c0_i32 = arith.constant 0 : i32
    %c0_i32_0 = arith.constant 0 : i32
    return %arg0, %c0_i32 : i32, i32
  }
}

</mosaic_0001>

<bundles_post_ra>
// kernel: tpu_custom_call.1
= control target key start
LH: loop header
LB: loop body
LE: loop exit
PB: predicated region body
PF: predicated region fallthrough
CT: control target
= control target key end

     0   :  { %8 = vsyncpa [#allocation3], 0  ;;  %s298_s0 = inlined_call_operand.hbm [shape: f32[16,32], index: 0, kind: input, shape index: {}]   ;;  %s299_s1 = inlined_call_operand.hbm [shape: f32[32,64], index: 1, kind: input, shape index: {}]   ;;  %s300_s2 = inlined_call_operand.vmem [shape: f32[1,64], index: 2, kind: input, shape index: {}]   ;;  %s301_s3 = inlined_call_operand.hbm [shape: f32[16,64], index: 3, kind: output, shape index: {}]  }
   0x1   :  { %9 = vsyncpa [#allocation6], 0 }
   0x2   :  { %10 = vsyncpa [#allocation4], 0  ;;  %s250_s12 = smov [#allocation2]  }
   0x3   :  { %s16_s13 = sshll.u32 %s250_s12, 4  ;;  %s17_s13 = int_to_ptr.vmem [resolvable:$true] %s16_s13 }
   0x4   :  { %s192_s14 = scalar_lea.vmem %s17_s13, 256  ;;  %p197_p1 = scmp.lt.s32.totalorder %s17_s13, %s17_s13 }
   0x5   :  { %p193_p0 = scmp.ne.s32.totalorder %s17_s13, %s192_s14  ;;  %p198_p2 = scmp.lt.s32.totalorder %s192_s14, %s192_s14 }
   0x7   :  { %p199_p3 = por %p198_p2, %p197_p1 }
   0x9   :  { %p200_p4 = pnand %p199_p3, %p193_p0 }
   0xb   :  { %203 = shalt.err (!%p200_p4)
}
   0xc   :  { %s251_s15 = smov 128   ;;  %s252_s16 = smov 8  }
   0xd   :  { %22 = dma.hbm_to_vmem [thread:$0]  %s298_s0, 256, %s17_s13, [#allocation3], %s251_s15, %s251_s15, %s252_s16  }
   0xe   :  { %s253_s19 = smov [#allocation5]  }
   0xf   :  { %s28_s20 = sshll.u32 %s253_s19, 4  ;;  %s29_s20 = int_to_ptr.vmem [resolvable:$true] %s28_s20 }
  0x10   :  { %s212_s21 = scalar_lea.vmem %s29_s20, 512  ;;  %p217_p6 = scmp.lt.s32.totalorder %s29_s20, %s29_s20 }
  0x11   :  { %p213_p5 = scmp.ne.s32.totalorder %s29_s20, %s212_s21  ;;  %p218_p7 = scmp.lt.s32.totalorder %s212_s21, %s212_s21 }
  0x13   :  { %p219_p8 = por %p218_p7, %p217_p6 }
  0x15   :  { %p220_p9 = pnand %p219_p8, %p213_p5 }
  0x17   :  { %223 = shalt.err (!%p220_p9)
}
  0x18   :  { %34 = dma.hbm_to_vmem [thread:$0]  %s299_s1, 512, %s29_s20, [#allocation6], %s251_s15, %s251_s15, %s252_s16  }
  0x19   :  { %244 = dma.done.wait [#allocation3], 256  }
  0x1a   :  { %245 = vsyncadd [#allocation3], 4294967040 }
  0x1b   :  { %246 = dma.done.wait [#allocation6], 512  }
  0x1c   :  { %247 = vsyncadd [#allocation6], 4294966784  ;;  %vm56_vm0 = vcmask 261120   ;;  %v48_v0 = vld [vmem:[#allocation5 + $0x18] sm:$0xff]  ;;  %v47_v1 = vld [vmem:[#allocation5 + $0x10] sm:$0xff]  ;;  %vm138_vm1 = vcmask 523264  }
  0x1d   :  { %168 = vmatprep.subr.mxu0 %v48_v0  ;;  %v43_v2 = vld [vmem:[#allocation2] sm:$0xff]  ;;  %v46_v3 = vld [vmem:[#allocation5 + $0x8] sm:$0xff]  ;;  %v45_v4 = vld [vmem:[#allocation5] sm:$0xff]  ;;  %s254_s24 = smov [#allocation7]  }
  0x1e   :  { %169 = vmatpush3.msra.mxu0 %v48_v0  ;;  %176 = vmatprep.mubr.msk.f32.mxu0 %vm56_vm0, %v43_v2  ;;  %v44_v5 = vld [vmem:[#allocation2 + $0x8] sm:$0xff]  ;;  %v159_v6 = vld [vmem:[%s300_s2] ss:$0 sm:$0xff]  ;;  %s146_s25 = sshll.u32 %s254_s24, 4  ;;  %s147_s25 = int_to_ptr.vmem [resolvable:$true] %s146_s25 }
  0x1f   :  { %170 = vmatprep.subr.mxu0 %v47_v1  ;;  %s224_s26 = scalar_lea.vmem %s147_s25, 256  ;;  %p229_p11 = scmp.lt.s32.totalorder %s147_s25, %s147_s25 }
  0x20   :  { %171 = vmatpush3.msra.mxu0 %v47_v1  ;;  %p225_p10 = scmp.ne.s32.totalorder %s147_s25, %s224_s26  ;;  %p230_p12 = scmp.lt.s32.totalorder %s224_s26, %s224_s26 }
  0x21   :  { %172 = vmatprep.subr.mxu0 %v46_v3 }
  0x22   :  { %173 = vmatpush3.msra.mxu0 %v46_v3  ;;  %p231_p13 = por %p230_p12, %p229_p11 }
  0x23   :  { %174 = vmatprep.subr.mxu0 %v45_v4 }
  0x24   :  { %175 = vmatpush3.msra.mxu0 %v45_v4  ;;  %p232_p0 = pnand %p231_p13, %p225_p10 }
  0x25   :  { %177 = vmatmul.mubr.msk.f32.vlgmr.msra.gmra.mxu0 %vm56_vm0, %v44_v5 }
  0xe5   :  { %v178_v7 = vpop.f32.mrf.mxu0 }
  0xe6   :  { %v135_v8 = vadd.f32 %v178_v7, %v159_v6 }
  0xe7   :  { %v129_v9 = vpop.f32.mrf.mxu0 }
  0xe8   :  { %v130_v10 = vadd.f32 %v159_v6, %v129_v9  ;;  %140 = vst.msk [vmem:[#allocation7 + $0x8] sm:$0xff] %vm138_vm1, %v135_v8 }
  0xea   :  { %139 = vst.msk [vmem:[#allocation7] sm:$0xff] %vm138_vm1, %v130_v10 }
  0xeb   :  { %235 = shalt.err (!%p232_p0)
}
  0xec   :  { %152 = dma.vmem_to_hbm [thread:$0]  %s147_s25, 256, %s301_s3, [#allocation4], %s251_s15, %s251_s15, %s252_s16  }
  0xed   :  { %248 = dma.done.wait [#allocation4], 256  }
  0xee   :  { %249 = vsyncadd [#allocation4], 4294967040 }
  0xef   :  { %156 = vsyncpa [#allocation3], 1 }
  0xf0   :  { %157 = vsyncpa [#allocation6], 1 }
  0xf1   :  { %158 = vsyncpa [#allocation4], 1 }

</bundles_post_ra>
